<compile_context>
chip_gen: v5e
topology: v5e:2x2
jax: 0.10.0
libtpu: 0.0.40
codegen_flags: <defaults>
</compile_context>

<pallas_src>
import functools

import jax
import jax.numpy as jnp
import numpy as np
from jax.experimental import pallas as pl
from jax.experimental.pallas import tpu as pltpu

LANE = 128
SUBLANE = 8


def _round_up(n, m):
    return ((n + m - 1) // m) * m


# ----------------------------- Pallas kernel ------------------------------- #

def gru_cell_kernel(x_ref, h_ref, w_x_ref, u_rz_ref, u_h_ref, b_rz_ref, b_h_ref,
                    out_ref, *, hidden_pad):
    Hp = hidden_pad

    x_bf = x_ref[...].astype(jnp.bfloat16)       # (TB, Ip)  MXU operand only
    h_f32 = h_ref[...].astype(jnp.float32)       # (TB, Hp)  elementwise math
    h_bf = h_f32.astype(jnp.bfloat16)            # MXU operand

    # Hoisted bias loads (broadcast_in_dim is not CSE'd by JAX).
    b_rz = b_rz_ref[...].astype(jnp.float32)     # (1, 2Hp)
    b_h = b_h_ref[...].astype(jnp.float32)       # (1, Hp)

    # Fused input projection: [r | z | candidate] pre-activations (TB, 3Hp).
    gx = jnp.dot(x_bf, w_x_ref[...], preferred_element_type=jnp.float32)
    # Fused hidden projection for the r and z gates (TB, 2Hp).
    gh = jnp.dot(h_bf, u_rz_ref[...], preferred_element_type=jnp.float32)

    # Hp is a multiple of 128 -> every slice point below is lane-tile aligned.
    rz = jax.nn.sigmoid(gx[:, :2 * Hp] + gh + b_rz)   # one EUP pass, both gates
    r = rz[:, :Hp]
    z = rz[:, Hp:]

    rh_bf = (r * h_f32).astype(jnp.bfloat16)
    cand = jnp.dot(rh_bf, u_h_ref[...], preferred_element_type=jnp.float32)
    th = jnp.tanh(gx[:, 2 * Hp:] + cand + b_h)

    out_ref[...] = ((1.0 - z) * h_f32 + z * th).astype(out_ref.dtype)


# --------------------------- parameter preparation -------------------------- #

def prepare_gru_params(params):
    """Fuse, zero-pad (to lane multiples) and bf16-cast the GRU weights.

    Call ONCE at parameter-prep time — never inside a per-timestep scan step
    (the concats would otherwise copy every weight byte each timestep).
    Weight layout is (in, out): the kernel computes y = x @ W + b.
    Zero padding keeps the padded output columns exactly 0 through the GRU math.
    """
    I, H = params["Wr"].shape
    Ip = _round_up(I, LANE)
    Hp = _round_up(H, LANE)

    def pad2(a, rows, cols):
        return jnp.pad(a, ((0, rows - a.shape[0]), (0, cols - a.shape[1])))

    w_x = jnp.concatenate(
        [pad2(params["Wr"], Ip, Hp), pad2(params["Wz"], Ip, Hp),
         pad2(params["Wh"], Ip, Hp)], axis=1).astype(jnp.bfloat16)      # (Ip, 3Hp)
    u_rz = jnp.concatenate(
        [pad2(params["Ur"], Hp, Hp), pad2(params["Uz"], Hp, Hp)],
        axis=1).astype(jnp.bfloat16)                                    # (Hp, 2Hp)
    u_h = pad2(params["Uh"], Hp, Hp).astype(jnp.bfloat16)               # (Hp, Hp)
    b_rz = jnp.concatenate(
        [pad2(params["br"], 1, Hp), pad2(params["bz"], 1, Hp)],
        axis=1).astype(jnp.float32)                                     # (1, 2Hp)
    b_h = pad2(params["bh"], 1, Hp).astype(jnp.float32)                 # (1, Hp)

    return dict(w_x=w_x, u_rz=u_rz, u_h=u_h, b_rz=b_rz, b_h=b_h,
                input_dim=I, hidden_dim=H, input_pad=Ip, hidden_pad=Hp)


# ------------------------------ wrapper ------------------------------------ #

def gru_cell(inputs, hidden, prepared, *, block_b=None, single_buffer_weights=True):
    """GRUCell forward.  inputs: (B, I), hidden: (B, H) -> (B, H)."""
    B, I = inputs.shape
    B2, H = hidden.shape
    assert B == B2, "batch mismatch between inputs and hidden"
    assert I == prepared["input_dim"] and H == prepared["hidden_dim"]
    Ip, Hp = prepared["input_pad"], prepared["hidden_pad"]

    # Batch tiling: multiple-of-8 tiles, <= 512 rows, >= 2 grid steps whenever
    # the batch allows (v7x megacore). Ragged batches are zero-padded (never a
    # whole-batch single block).
    if block_b is None:
        if B <= SUBLANE:
            block_b = SUBLANE
        else:
            block_b = min(512, _round_up(pl.cdiv(B, 2), SUBLANE))
    block_b = max(SUBLANE, _round_up(block_b, SUBLANE))
    Bp = _round_up(B, block_b)
    nb = Bp // block_b

    x_p = jnp.pad(inputs, ((0, Bp - B), (0, Ip - I)))
    h_p = jnp.pad(hidden, ((0, Bp - B), (0, Hp - H)))

    # Explicit VMEM budget: resident weights (single- or double-buffered) plus
    # double-buffered activation/output tiles, 2x headroom, clamped to
    # [32 MiB default scoped limit, 64 MiB v7x physical].
    w_bufs = 1 if single_buffer_weights else 2
    weight_bytes = 2 * (Ip * 3 * Hp + Hp * 2 * Hp + Hp * Hp) + 4 * 3 * Hp
    act_bytes = block_b * (Ip * x_p.dtype.itemsize + 2 * Hp * h_p.dtype.itemsize)
    est = w_bufs * weight_bytes + 2 * act_bytes
    vmem_limit = int(min(64 << 20, max(32 << 20, 2 * est)))

    w_kwargs = dict(pipeline_mode=pl.Buffered(1)) if single_buffer_weights else {}

    def pinned(shape):
        return pl.BlockSpec(shape, lambda b, _nd=len(shape): (0,) * _nd, **w_kwargs)

    kernel = functools.partial(gru_cell_kernel, hidden_pad=Hp)
    out = pl.pallas_call(
        kernel,
        out_shape=jax.ShapeDtypeStruct((Bp, Hp), hidden.dtype),
        grid=(nb,),
        in_specs=[
            pl.BlockSpec((block_b, Ip), lambda b: (b, 0)),   # inputs tile
            pl.BlockSpec((block_b, Hp), lambda b: (b, 0)),   # hidden tile
            pinned((Ip, 3 * Hp)),                            # [Wr|Wz|Wh]  bf16
            pinned((Hp, 2 * Hp)),                            # [Ur|Uz]     bf16
            pinned((Hp, Hp)),                                # Uh          bf16
            pinned((1, 2 * Hp)),                             # [br|bz]
            pinned((1, Hp)),                                 # bh
        ],
        out_specs=pl.BlockSpec((block_b, Hp), lambda b: (b, 0)),
        compiler_params=pltpu.CompilerParams(
            dimension_semantics=("parallel",),               # batch tiles independent
            vmem_limit_bytes=vmem_limit),
    )(x_p, h_p, prepared["w_x"], prepared["u_rz"], prepared["u_h"],
      prepared["b_rz"], prepared["b_h"])

    return out[:B, :H]


# --------------------------- pure-JAX reference ----------------------------- #

def reference(x, h, p):
    r = jax.nn.sigmoid(x @ p["Wr"] + h @ p["Ur"] + p["br"])
    z = jax.nn.sigmoid(x @ p["Wz"] + h @ p["Uz"] + p["bz"])
    th = jnp.tanh(x @ p["Wh"] + (r * h) @ p["Uh"] + p["bh"])
    return (1.0 - z) * h + z * th


# --------------------------------- main ------------------------------------- #

if __name__ == "__main__":
    B, INPUT_DIM, HIDDEN_DIM = 2, 16, 32     # dropout_keep_prob = 1.0 (eval)

    key = jax.random.PRNGKey(0)
    keys = jax.random.split(key, 11)
    k = float(np.sqrt(1.0 / HIDDEN_DIM))     # init range from the torch module

    def u(kk, shape):
        return jax.random.uniform(kk, shape, jnp.float32, minval=-k, maxval=k)

    params = {
        "Wr": u(keys[0], (INPUT_DIM, HIDDEN_DIM)),
        "Wz": u(keys[1], (INPUT_DIM, HIDDEN_DIM)),
        "Wh": u(keys[2], (INPUT_DIM, HIDDEN_DIM)),
        "Ur": u(keys[3], (HIDDEN_DIM, HIDDEN_DIM)),
        "Uz": u(keys[4], (HIDDEN_DIM, HIDDEN_DIM)),
        "Uh": u(keys[5], (HIDDEN_DIM, HIDDEN_DIM)),
        "br": u(keys[6], (1, HIDDEN_DIM)),
        "bz": u(keys[7], (1, HIDDEN_DIM)),
        "bh": u(keys[8], (1, HIDDEN_DIM)),
    }

    x = jax.random.normal(keys[9], (B, INPUT_DIM), dtype=jnp.float32)
    h = jax.random.normal(keys[10], (B, HIDDEN_DIM), dtype=jnp.float32)

    prepared = prepare_gru_params(params)    # hoisted: fuse/pad/cast once

    try:
        out = jax.block_until_ready(gru_cell(x, h, prepared))
    except Exception:
        # pl.Buffered(1) pipeline_mode unsupported on this jax/libtpu build;
        # fall back to default (double-buffered but still pinned) weights.
        out = jax.block_until_ready(
            gru_cell(x, h, prepared, single_buffer_weights=False))

    ref = reference(x, h, params)
    assert out.shape == (B, HIDDEN_DIM)
    np.testing.assert_allclose(np.asarray(out), np.asarray(ref),
                               rtol=2e-2, atol=2e-2)
    print("KERNEL_OK")
</pallas_src>

<mosaic_0001>
module attributes {stable_mosaic.version = 11 : i64} {
  func.func @gru_cell_kernel(%arg0: i32, %arg1: memref<8x128xf32, #tpu.memory_space<vmem>>, %arg2: memref<8x128xf32, #tpu.memory_space<vmem>>, %arg3: memref<128x384xbf16, #tpu.memory_space<vmem>>, %arg4: memref<128x256xbf16, #tpu.memory_space<vmem>>, %arg5: memref<128x128xbf16, #tpu.memory_space<vmem>>, %arg6: memref<1x256xf32, #tpu.memory_space<vmem>>, %arg7: memref<1x128xf32, #tpu.memory_space<vmem>>, %arg8: memref<8x128xf32, #tpu.memory_space<vmem>>) attributes {dimension_semantics = [#tpu.dimension_semantics<parallel>], iteration_bounds = array<i64: 1>, scalar_prefetch = 0 : i64, scratch_operands = 0 : i64, tpu.core_type = #tpu.core_type<tc>, window_params = [{transform_indices = @transform_0, window_bounds = array<i64: 8, 128>}, {transform_indices = @transform_1, window_bounds = array<i64: 8, 128>}, {pipeline_mode = #tpu.pipeline_mode<synchronous>, transform_indices = @transform_2, window_bounds = array<i64: 128, 384>}, {pipeline_mode = #tpu.pipeline_mode<synchronous>, transform_indices = @transform_3, window_bounds = array<i64: 128, 256>}, {pipeline_mode = #tpu.pipeline_mode<synchronous>, transform_indices = @transform_4, window_bounds = array<i64: 128, 128>}, {pipeline_mode = #tpu.pipeline_mode<synchronous>, transform_indices = @transform_5, window_bounds = array<i64: 1, 256>}, {pipeline_mode = #tpu.pipeline_mode<synchronous>, transform_indices = @transform_6, window_bounds = array<i64: 1, 128>}, {transform_indices = @transform_7, window_bounds = array<i64: 8, 128>}]} {
    %c0 = arith.constant 0 : index
    %c0_0 = arith.constant 0 : index
    %0 = vector.load %arg1[%c0, %c0_0] : memref<8x128xf32, #tpu.memory_space<vmem>>, vector<8x128xf32>
    %1 = arith.truncf %0 : vector<8x128xf32> to vector<8x128xbf16>
    %c0_1 = arith.constant 0 : index
    %c0_2 = arith.constant 0 : index
    %2 = vector.load %arg2[%c0_1, %c0_2] : memref<8x128xf32, #tpu.memory_space<vmem>>, vector<8x128xf32>
    %3 = arith.truncf %2 : vector<8x128xf32> to vector<8x128xbf16>
    %c0_3 = arith.constant 0 : index
    %c0_4 = arith.constant 0 : index
    %4 = vector.load %arg6[%c0_3, %c0_4] : memref<1x256xf32, #tpu.memory_space<vmem>>, vector<1x256xf32>
    %c0_5 = arith.constant 0 : index
    %c0_6 = arith.constant 0 : index
    %5 = vector.load %arg7[%c0_5, %c0_6] : memref<1x128xf32, #tpu.memory_space<vmem>>, vector<1x128xf32>
    %c0_7 = arith.constant 0 : index
    %c0_8 = arith.constant 0 : index
    %6 = vector.load %arg3[%c0_7, %c0_8] : memref<128x384xbf16, #tpu.memory_space<vmem>>, vector<128x384xbf16>
    %cst = arith.constant dense<0.000000e+00> : vector<8x384xf32>
    %7 = tpu.matmul %1, %6, %cst {dimension_numbers = #tpu.dot_dimension_numbers<[1], [0], [0], [1], [0, 0, 1, 1], [], []>} : vector<8x128xbf16>, vector<128x384xbf16>, vector<8x384xf32> -> vector<8x384xf32>
    %c0_9 = arith.constant 0 : index
    %c0_10 = arith.constant 0 : index
    %8 = vector.load %arg4[%c0_9, %c0_10] : memref<128x256xbf16, #tpu.memory_space<vmem>>, vector<128x256xbf16>
    %cst_11 = arith.constant dense<0.000000e+00> : vector<8x256xf32>
    %9 = tpu.matmul %3, %8, %cst_11 {dimension_numbers = #tpu.dot_dimension_numbers<[1], [0], [0], [1], [0, 0, 1, 1], [], []>} : vector<8x128xbf16>, vector<128x256xbf16>, vector<8x256xf32> -> vector<8x256xf32>
    %10 = vector.extract_strided_slice %7 {offsets = [0, 0], sizes = [8, 256], strides = [1, 1]} : vector<8x384xf32> to vector<8x256xf32>
    %11 = arith.addf %10, %9 : vector<8x256xf32>
    %12 = vector.broadcast %4 : vector<1x256xf32> to vector<8x256xf32>
    %13 = arith.addf %11, %12 : vector<8x256xf32>
    %14 = arith.negf %13 : vector<8x256xf32>
    %15 = math.exp %14 : vector<8x256xf32>
    %cst_12 = arith.constant 1.000000e+00 : f32
    %16 = vector.broadcast %cst_12 : f32 to vector<8x256xf32>
    %17 = arith.addf %16, %15 : vector<8x256xf32>
    %18 = arith.divf %16, %17 : vector<8x256xf32>
    %19 = vector.extract_strided_slice %18 {offsets = [0, 0], sizes = [8, 128], strides = [1, 1]} : vector<8x256xf32> to vector<8x128xf32>
    %20 = vector.extract_strided_slice %18 {offsets = [0, 128], sizes = [8, 128], strides = [1, 1]} : vector<8x256xf32> to vector<8x128xf32>
    %21 = arith.mulf %19, %2 : vector<8x128xf32>
    %22 = arith.truncf %21 : vector<8x128xf32> to vector<8x128xbf16>
    %c0_13 = arith.constant 0 : index
    %c0_14 = arith.constant 0 : index
    %23 = vector.load %arg5[%c0_13, %c0_14] : memref<128x128xbf16, #tpu.memory_space<vmem>>, vector<128x128xbf16>
    %cst_15 = arith.constant dense<0.000000e+00> : vector<8x128xf32>
    %24 = tpu.matmul %22, %23, %cst_15 {dimension_numbers = #tpu.dot_dimension_numbers<[1], [0], [0], [1], [0, 0, 1, 1], [], []>} : vector<8x128xbf16>, vector<128x128xbf16>, vector<8x128xf32> -> vector<8x128xf32>
    %25 = vector.extract_strided_slice %7 {offsets = [0, 256], sizes = [8, 128], strides = [1, 1]} : vector<8x384xf32> to vector<8x128xf32>
    %26 = arith.addf %25, %24 : vector<8x128xf32>
    %27 = vector.broadcast %5 : vector<1x128xf32> to vector<8x128xf32>
    %28 = arith.addf %26, %27 : vector<8x128xf32>
    %29 = math.tanh %28 : vector<8x128xf32>
    %cst_16 = arith.constant 1.000000e+00 : f32
    %30 = vector.broadcast %cst_16 : f32 to vector<8x128xf32>
    %31 = arith.subf %30, %20 : vector<8x128xf32>
    %32 = arith.mulf %31, %2 : vector<8x128xf32>
    %33 = arith.mulf %20, %29 : vector<8x128xf32>
    %34 = arith.addf %32, %33 : vector<8x128xf32>
    %c0_17 = arith.constant 0 : index
    %c0_18 = arith.constant 0 : index
    %35 = vector.load %arg8[%c0_17, %c0_18] : memref<8x128xf32, #tpu.memory_space<vmem>>, vector<8x128xf32>
    tpu.vector_store %arg8[%c0_17, %c0_18], %34 {strides = array<i32>} : memref<8x128xf32, #tpu.memory_space<vmem>>, vector<8x128xf32>,
    return
  }
  func.func @transform_0(%arg0: i32) -> (i32, i32) {
    %c0_i32 = arith.constant 0 : i32
    %c0_i32_0 = arith.constant 0 : i32
    return %arg0, %c0_i32 : i32, i32
  }
  func.func @transform_1(%arg0: i32) -> (i32, i32) {
    %c0_i32 = arith.constant 0 : i32
    %c0_i32_0 = arith.constant 0 : i32
    return %arg0, %c0_i32 : i32, i32
  }
  func.func @transform_2(%arg0: i32) -> (i32, i32) {
    %c0_i32 = arith.constant 0 : i32
    %c0_i32_0 = arith.constant 0 : i32
    %c0_i32_1 = arith.constant 0 : i32
    return %c0_i32, %c0_i32_0 : i32, i32
  }
  func.func @transform_3(%arg0: i32) -> (i32, i32) {
    %c0_i32 = arith.constant 0 : i32
    %c0_i32_0 = arith.constant 0 : i32
    %c0_i32_1 = arith.constant 0 : i32
    return %c0_i32, %c0_i32_0 : i32, i32
  }
  func.func @transform_4(%arg0: i32) -> (i32, i32) {
    %c0_i32 = arith.constant 0 : i32
    %c0_i32_0 = arith.constant 0 : i32
    %c0_i32_1 = arith.constant 0 : i32
    return %c0_i32, %c0_i32_0 : i32, i32
  }
  func.func @transform_5(%arg0: i32) -> (i32, i32) {
    %c0_i32 = arith.constant 0 : i32
    %c0_i32_0 = arith.constant 0 : i32
    %c0_i32_1 = arith.constant 0 : i32
    return %c0_i32, %c0_i32_0 : i32, i32
  }
  func.func @transform_6(%arg0: i32) -> (i32, i32) {
    %c0_i32 = arith.constant 0 : i32
    %c0_i32_0 = arith.constant 0 : i32
    %c0_i32_1 = arith.constant 0 : i32
    return %c0_i32, %c0_i32_0 : i32, i32
  }
  func.func @transform_7(%arg0: i32) -> (i32, i32) {
    %c0_i32 = arith.constant 0 : i32
    %c0_i32_0 = arith.constant 0 : i32
    return %arg0, %c0_i32 : i32, i32
  }
}

module attributes {stable_mosaic.version = 11 : i64} {
  func.func @gru_cell_kernel(%arg0: i32, %arg1: memref<8x128xf32, #tpu.memory_space<vmem>>, %arg2: memref<8x128xf32, #tpu.memory_space<vmem>>, %arg3: memref<128x384xbf16, #tpu.memory_space<vmem>>, %arg4: memref<128x256xbf16, #tpu.memory_space<vmem>>, %arg5: memref<128x128xbf16, #tpu.memory_space<vmem>>, %arg6: memref<1x256xf32, #tpu.memory_space<vmem>>, %arg7: memref<1x128xf32, #tpu.memory_space<vmem>>, %arg8: memref<8x128xf32, #tpu.memory_space<vmem>>) attributes {dimension_semantics = [#tpu.dimension_semantics<parallel>], iteration_bounds = array<i64: 1>, scalar_prefetch = 0 : i64, scratch_operands = 0 : i64, tpu.core_type = #tpu.core_type<tc>, window_params = [{transform_indices = @transform_0, window_bounds = array<i64: 8, 128>}, {transform_indices = @transform_1, window_bounds = array<i64: 8, 128>}, {pipeline_mode = #tpu.pipeline_mode<synchronous>, transform_indices = @transform_2, window_bounds = array<i64: 128, 384>}, {pipeline_mode = #tpu.pipeline_mode<synchronous>, transform_indices = @transform_3, window_bounds = array<i64: 128, 256>}, {pipeline_mode = #tpu.pipeline_mode<synchronous>, transform_indices = @transform_4, window_bounds = array<i64: 128, 128>}, {pipeline_mode = #tpu.pipeline_mode<synchronous>, transform_indices = @transform_5, window_bounds = array<i64: 1, 256>}, {pipeline_mode = #tpu.pipeline_mode<synchronous>, transform_indices = @transform_6, window_bounds = array<i64: 1, 128>}, {transform_indices = @transform_7, window_bounds = array<i64: 8, 128>}]} {
    %c0 = arith.constant 0 : index
    %c0_0 = arith.constant 0 : index
    %0 = vector.load %arg1[%c0, %c0_0] : memref<8x128xf32, #tpu.memory_space<vmem>>, vector<8x128xf32>
    %1 = arith.truncf %0 : vector<8x128xf32> to vector<8x128xbf16>
    %c0_1 = arith.constant 0 : index
    %c0_2 = arith.constant 0 : index
    %2 = vector.load %arg2[%c0_1, %c0_2] : memref<8x128xf32, #tpu.memory_space<vmem>>, vector<8x128xf32>
    %3 = arith.truncf %2 : vector<8x128xf32> to vector<8x128xbf16>
    %c0_3 = arith.constant 0 : index
    %c0_4 = arith.constant 0 : index
    %4 = vector.load %arg6[%c0_3, %c0_4] : memref<1x256xf32, #tpu.memory_space<vmem>>, vector<1x256xf32>
    %c0_5 = arith.constant 0 : index
    %c0_6 = arith.constant 0 : index
    %5 = vector.load %arg7[%c0_5, %c0_6] : memref<1x128xf32, #tpu.memory_space<vmem>>, vector<1x128xf32>
    %c0_7 = arith.constant 0 : index
    %c0_8 = arith.constant 0 : index
    %6 = vector.load %arg3[%c0_7, %c0_8] : memref<128x384xbf16, #tpu.memory_space<vmem>>, vector<128x384xbf16>
    %cst = arith.constant dense<0.000000e+00> : vector<8x384xf32>
    %7 = tpu.matmul %1, %6, %cst {dimension_numbers = #tpu.dot_dimension_numbers<[1], [0], [0], [1], [0, 0, 1, 1], [], []>} : vector<8x128xbf16>, vector<128x384xbf16>, vector<8x384xf32> -> vector<8x384xf32>
    %c0_9 = arith.constant 0 : index
    %c0_10 = arith.constant 0 : index
    %8 = vector.load %arg4[%c0_9, %c0_10] : memref<128x256xbf16, #tpu.memory_space<vmem>>, vector<128x256xbf16>
    %cst_11 = arith.constant dense<0.000000e+00> : vector<8x256xf32>
    %9 = tpu.matmul %3, %8, %cst_11 {dimension_numbers = #tpu.dot_dimension_numbers<[1], [0], [0], [1], [0, 0, 1, 1], [], []>} : vector<8x128xbf16>, vector<128x256xbf16>, vector<8x256xf32> -> vector<8x256xf32>
    %10 = vector.extract_strided_slice %7 {offsets = [0, 0], sizes = [8, 256], strides = [1, 1]} : vector<8x384xf32> to vector<8x256xf32>
    %11 = arith.addf %10, %9 : vector<8x256xf32>
    %12 = vector.broadcast %4 : vector<1x256xf32> to vector<8x256xf32>
    %13 = arith.addf %11, %12 : vector<8x256xf32>
    %14 = arith.negf %13 : vector<8x256xf32>
    %15 = math.exp %14 : vector<8x256xf32>
    %cst_12 = arith.constant 1.000000e+00 : f32
    %16 = vector.broadcast %cst_12 : f32 to vector<8x256xf32>
    %17 = arith.addf %16, %15 : vector<8x256xf32>
    %18 = arith.divf %16, %17 : vector<8x256xf32>
    %19 = vector.extract_strided_slice %18 {offsets = [0, 0], sizes = [8, 128], strides = [1, 1]} : vector<8x256xf32> to vector<8x128xf32>
    %20 = vector.extract_strided_slice %18 {offsets = [0, 128], sizes = [8, 128], strides = [1, 1]} : vector<8x256xf32> to vector<8x128xf32>
    %21 = arith.mulf %19, %2 : vector<8x128xf32>
    %22 = arith.truncf %21 : vector<8x128xf32> to vector<8x128xbf16>
    %c0_13 = arith.constant 0 : index
    %c0_14 = arith.constant 0 : index
    %23 = vector.load %arg5[%c0_13, %c0_14] : memref<128x128xbf16, #tpu.memory_space<vmem>>, vector<128x128xbf16>
    %cst_15 = arith.constant dense<0.000000e+00> : vector<8x128xf32>
    %24 = tpu.matmul %22, %23, %cst_15 {dimension_numbers = #tpu.dot_dimension_numbers<[1], [0], [0], [1], [0, 0, 1, 1], [], []>} : vector<8x128xbf16>, vector<128x128xbf16>, vector<8x128xf32> -> vector<8x128xf32>
    %25 = vector.extract_strided_slice %7 {offsets = [0, 256], sizes = [8, 128], strides = [1, 1]} : vector<8x384xf32> to vector<8x128xf32>
    %26 = arith.addf %25, %24 : vector<8x128xf32>
    %27 = vector.broadcast %5 : vector<1x128xf32> to vector<8x128xf32>
    %28 = arith.addf %26, %27 : vector<8x128xf32>
    %29 = math.tanh %28 : vector<8x128xf32>
    %cst_16 = arith.constant 1.000000e+00 : f32
    %30 = vector.broadcast %cst_16 : f32 to vector<8x128xf32>
    %31 = arith.subf %30, %20 : vector<8x128xf32>
    %32 = arith.mulf %31, %2 : vector<8x128xf32>
    %33 = arith.mulf %20, %29 : vector<8x128xf32>
    %34 = arith.addf %32, %33 : vector<8x128xf32>
    %c0_17 = arith.constant 0 : index
    %c0_18 = arith.constant 0 : index
    %35 = vector.load %arg8[%c0_17, %c0_18] : memref<8x128xf32, #tpu.memory_space<vmem>>, vector<8x128xf32>
    tpu.vector_store %arg8[%c0_17, %c0_18], %34 {strides = array<i32>} : memref<8x128xf32, #tpu.memory_space<vmem>>, vector<8x128xf32>,
    return
  }
  func.func @transform_0(%arg0: i32) -> (i32, i32) {
    %c0_i32 = arith.constant 0 : i32
    %c0_i32_0 = arith.constant 0 : i32
    return %arg0, %c0_i32 : i32, i32
  }
  func.func @transform_1(%arg0: i32) -> (i32, i32) {
    %c0_i32 = arith.constant 0 : i32
    %c0_i32_0 = arith.constant 0 : i32
    return %arg0, %c0_i32 : i32, i32
  }
  func.func @transform_2(%arg0: i32) -> (i32, i32) {
    %c0_i32 = arith.constant 0 : i32
    %c0_i32_0 = arith.constant 0 : i32
    %c0_i32_1 = arith.constant 0 : i32
    return %c0_i32, %c0_i32_0 : i32, i32
  }
  func.func @transform_3(%arg0: i32) -> (i32, i32) {
    %c0_i32 = arith.constant 0 : i32
    %c0_i32_0 = arith.constant 0 : i32
    %c0_i32_1 = arith.constant 0 : i32
    return %c0_i32, %c0_i32_0 : i32, i32
  }
  func.func @transform_4(%arg0: i32) -> (i32, i32) {
    %c0_i32 = arith.constant 0 : i32
    %c0_i32_0 = arith.constant 0 : i32
    %c0_i32_1 = arith.constant 0 : i32
    return %c0_i32, %c0_i32_0 : i32, i32
  }
  func.func @transform_5(%arg0: i32) -> (i32, i32) {
    %c0_i32 = arith.constant 0 : i32
    %c0_i32_0 = arith.constant 0 : i32
    %c0_i32_1 = arith.constant 0 : i32
    return %c0_i32, %c0_i32_0 : i32, i32
  }
  func.func @transform_6(%arg0: i32) -> (i32, i32) {
    %c0_i32 = arith.constant 0 : i32
    %c0_i32_0 = arith.constant 0 : i32
    %c0_i32_1 = arith.constant 0 : i32
    return %c0_i32, %c0_i32_0 : i32, i32
  }
  func.func @transform_7(%arg0: i32) -> (i32, i32) {
    %c0_i32 = arith.constant 0 : i32
    %c0_i32_0 = arith.constant 0 : i32
    return %arg0, %c0_i32 : i32, i32
  }
}

</mosaic_0001>

<bundles_post_ra>
// kernel: tpu_custom_call.1
= control target key start
LH: loop header
LB: loop body
LE: loop exit
PB: predicated region body
PF: predicated region fallthrough
CT: control target
= control target key end

     0   :  { %12 = vsyncpa [#allocation3], 0  ;;  %s1088_s0 = inlined_call_operand.hbm [shape: f32[8,128], index: 0, kind: input, shape index: {}]   ;;  %s1089_s1 = inlined_call_operand.hbm [shape: f32[8,128], index: 1, kind: input, shape index: {}]   ;;  %s1090_s2 = inlined_call_operand.hbm [shape: bf16[128,384], index: 2, kind: input, shape index: {}]   ;;  %s1091_s3 = inlined_call_operand.hbm [shape: bf16[128,256], index: 3, kind: input, shape index: {}]   ;;  %s1092_s4 = inlined_call_operand.hbm [shape: bf16[128,128], index: 4, kind: input, shape index: {}]   ;;  %s1093_s5 = inlined_call_operand.vmem [shape: f32[1,256], index: 5, kind: input, shape index: {}]   ;;  %s1094_s6 = inlined_call_operand.vmem [shape: f32[1,128], index: 6, kind: input, shape index: {}]   ;;  %s1095_s7 = inlined_call_operand.hbm [shape: f32[8,128], index: 7, kind: output, shape index: {}]  }
   0x1   :  { %13 = vsyncpa [#allocation6], 0 }
   0x2   :  { %14 = vsyncpa [#allocation9], 0  ;;  %s32_s26 = sshll.u32 %s1089_s1, 4  ;;  %s33_s26 = int_to_ptr.hbm [resolvable:$true] %s32_s26 }
   0x3   :  { %15 = vsyncpa [#allocation4], 0  ;;  %s1001_s27 = smov [#allocation5]   ;;  %s55_s8 = sshll.u32 %s1091_s3, 4  ;;  %s56_s8 = int_to_ptr.hbm [resolvable:$true] %s55_s8 }
   0x4   :  { %s34_s28 = sshll.u32 %s1001_s27, 4  ;;  %s1002_s9 = smov [#allocation8]   ;;  %s35_s28 = int_to_ptr.vmem [resolvable:$true] %s34_s28 }
   0x5   :  { %37 = dma.hbm_to_vmem [thread:$0]  %s33_s26, 128, %s35_s28, [#allocation6]  }
   0x6   :  { %s57_s10 = sshll.u32 %s1002_s9, 4  ;;  %s1003_s11 = smov 128   ;;  %s58_s10 = int_to_ptr.vmem [resolvable:$true] %s57_s10 }
   0x7   :  { %s1004_s12 = smov 8   ;;  %s21_s1 = sshll.u32 %s1088_s0, 4  ;;  %s22_s1 = int_to_ptr.hbm [resolvable:$true] %s21_s1 }
   0x8   :  { %63 = dma.hbm_to_vmem [thread:$0]  %s56_s8, 2048, %s58_s10, [#allocation9], %s1003_s11, %s1003_s11, %s1004_s12  }
   0x9   :  { %s1005_s15 = smov [#allocation2]   ;;  %s42_s3 = sshll.u32 %s1090_s2, 4  ;;  %s43_s3 = int_to_ptr.hbm [resolvable:$true] %s42_s3 }
   0xa   :  { %s23_s16 = sshll.u32 %s1005_s15, 4  ;;  %s1006_s19 = smov [#allocation7]   ;;  %s24_s16 = int_to_ptr.vmem [resolvable:$true] %s23_s16 }
   0xb   :  { %26 = dma.hbm_to_vmem [thread:$0]  %s22_s1, 128, %s24_s16, [#allocation3]  }
   0xc   :  { %s44_s20 = sshll.u32 %s1006_s19, 4  ;;  %s1007_s21 = smov 192   ;;  %s45_s20 = int_to_ptr.vmem [resolvable:$true] %s44_s20 }
   0xd   :  { %s1008_s22 = smov 12   ;;  %s68_s0 = sshll.u32 %s1092_s4, 4  ;;  %s69_s0 = int_to_ptr.hbm [resolvable:$true] %s68_s0 }
   0xe   :  { %50 = dma.hbm_to_vmem [thread:$0]  %s43_s3, 3072, %s45_s20, [#allocation6], %s1007_s21, %s1007_s21, %s1008_s22  }
   0xf   :  { %s1009_s25 = smov [#allocation10]   ;;  %s1010_s27 = smov 64  }
  0x10   :  { %s70_s26 = sshll.u32 %s1009_s25, 4  ;;  %s1011_s28 = smov 4   ;;  %s71_s26 = int_to_ptr.vmem [resolvable:$true] %s70_s26 }
  0x11   :  { %76 = dma.hbm_to_vmem [thread:$0]  %s69_s0, 1024, %s71_s26, [#allocation9], %s1010_s27, %s1010_s27, %s1011_s28  }
  0x12   :  { %993 = dma.done.wait [#allocation3], 128  }
  0x13   :  { %994 = vsyncadd [#allocation3], 4294967168 }
  0x14   :  { %995 = dma.done.wait [#allocation6], 3200  }
  0x15   :  { %996 = vsyncadd [#allocation6], 4294964096 }
  0x16   :  { %997 = dma.done.wait [#allocation9], 3072  }
  0x17   :  { %998 = vsyncadd [#allocation9], 4294964224  ;;  %v670_v0 = vld [vmem:[#allocation7 + $0xa8] sm:$0xf]  ;;  %v800_v1 = vld [vmem:[#allocation7 + $0xb0] sm:$0xf0] }
  0x18   :  { %v738_v2 = vld [vmem:[#allocation8 + $0x70] sm:$0xf]  ;;  %v671_v3 = vor.u32 %v800_v1, %v670_v0  ;;  %v817_v4 = vld [vmem:[#allocation8 + $0x74] sm:$0xf0]  ;;  %v797_v6 = vld [vmem:[#allocation7 + $0x98] sm:$0xf0] }
  0x19   :  { %v658_v5 = vld [vmem:[#allocation7 + $0x90] sm:$0xf]  ;;  %v739_v7 = vor.u32 %v817_v4, %v738_v2  ;;  %v730_v8 = vld [vmem:[#allocation8 + $0x60] sm:$0xf]  ;;  %v815_v9 = vld [vmem:[#allocation8 + $0x64] sm:$0xf0] }
  0x1a   :  { %267 = vmatpush.bf16.msra.mxu0 %v671_v3  ;;  %v659_v10 = vor.u32 %v797_v6, %v658_v5  ;;  %v731_v11 = vor.u32 %v815_v9, %v730_v8  ;;  %v646_v12 = vld [vmem:[#allocation7 + $0x78] sm:$0xf]  ;;  %v794_v13 = vld [vmem:[#allocation7 + $0x80] sm:$0xf0]  ;;  %v722_v14 = vld [vmem:[#allocation8 + $0x50] sm:$0xf] }
  0x1b   :  { %402 = vmatpush.bf16.msra.mxu3 %v739_v7  ;;  %v813_v15 = vld [vmem:[#allocation8 + $0x54] sm:$0xf0]  ;;  %v647_v16 = vor.u32 %v794_v13, %v646_v12  ;;  %v634_v18 = vld [vmem:[#allocation7 + $0x60] sm:$0xf]  ;;  %v791_v19 = vld [vmem:[#allocation7 + $0x68] sm:$0xf0] }
  0x1c   :  { %v723_v17 = vor.u32 %v813_v15, %v722_v14  ;;  %v714_v20 = vld [vmem:[#allocation8 + $0x40] sm:$0xf]  ;;  %v811_v21 = vld [vmem:[#allocation8 + $0x44] sm:$0xf0]  ;;  %v635_v22 = vor.u32 %v791_v19, %v634_v18  ;;  %v799_v23 = vld [vmem:[#allocation7 + $0xac] sm:$0xf] }
  0x1d   :  { %v672_v24 = vld [vmem:[#allocation7 + $0xb4] sm:$0xf0]  ;;  %v715_v25 = vor.u32 %v811_v21, %v714_v20  ;;  %v622_v26 = vld [vmem:[#allocation7 + $0x48] sm:$0xf]  ;;  %v788_v27 = vld [vmem:[#allocation7 + $0x50] sm:$0xf0] }
  0x1e   :  { %268 = vmatpush.bf16.msra.mxu0 %v659_v10  ;;  %v675_v28 = vor.u32 %v799_v23, %v672_v24  ;;  %v796_v29 = vld [vmem:[#allocation7 + $0x94] sm:$0xf]  ;;  %v706_v30 = vld [vmem:[#allocation8 + $0x30] sm:$0xf]  ;;  %v809_v31 = vld [vmem:[#allocation8 + $0x34] sm:$0xf0]  ;;  %v623_v34 = vor.u32 %v788_v27, %v622_v26 }
  0x1f   :  { %403 = vmatpush.bf16.msra.mxu3 %v731_v11  ;;  %v660_v32 = vld [vmem:[#allocation7 + $0x9c] sm:$0xf0]  ;;  %v793_v35 = vld [vmem:[#allocation7 + $0x7c] sm:$0xf]  ;;  %v648_v36 = vld [vmem:[#allocation7 + $0x84] sm:$0xf0]  ;;  %v707_v37 = vor.u32 %v809_v31, %v706_v30 }
  0x20   :  { %280 = vmatpush.bf16.msra.mxu1 %v675_v28  ;;  %v663_v33 = vor.u32 %v796_v29, %v660_v32  ;;  %v610_v38 = vld [vmem:[#allocation7 + $0x30] sm:$0xf]  ;;  %v785_v39 = vld [vmem:[#allocation7 + $0x38] sm:$0xf0]  ;;  %v698_v40 = vld [vmem:[#allocation8 + $0x20] sm:$0xf]  ;;  %v651_v43 = vor.u32 %v793_v35, %v648_v36 }
  0x21   :  { %v807_v41 = vld [vmem:[#allocation8 + $0x24] sm:$0xf0]  ;;  %v598_v42 = vld [vmem:[#allocation7 + $0x18] sm:$0xf]  ;;  %v611_v44 = vor.u32 %v785_v39, %v610_v38  ;;  %v790_v45 = vld [vmem:[#allocation7 + $0x64] sm:$0xf] }
  0x22   :  { %269 = vmatpush.bf16.msra.mxu0 %v647_v16  ;;  %v636_v46 = vld [vmem:[#allocation7 + $0x6c] sm:$0xf0]  ;;  %v699_v47 = vor.u32 %v807_v41, %v698_v40  ;;  %v782_v48 = vld [vmem:[#allocation7 + $0x20] sm:$0xf0]  ;;  %v801_v50 = vld [vmem:[#allocation7 + $0xb8] sm:$0xf0] }
  0x23   :  { %404 = vmatpush.bf16.msra.mxu3 %v723_v17  ;;  %v678_v49 = vld [vmem:[#allocation7 + $0xb0] sm:$0xf]  ;;  %v805_v52 = vld [vmem:[#allocation8 + $0x14] sm:$0xf0]  ;;  %v639_v54 = vor.u32 %v790_v45, %v636_v46  ;;  %v599_v55 = vor.u32 %v782_v48, %v598_v42  ;;  %v787_v56 = vld [vmem:[#allocation7 + $0x4c] sm:$0xf] }
  0x24   :  { %281 = vmatpush.bf16.msra.mxu1 %v663_v33  ;;  %v690_v51 = vld [vmem:[#allocation8 + $0x10] sm:$0xf]  ;;  %v679_v53 = vor.u32 %v801_v50, %v678_v49  ;;  %v624_v57 = vld [vmem:[#allocation7 + $0x54] sm:$0xf0]  ;;  %v586_v59 = vld [vmem:[#allocation7] sm:$0xf] }
  0x25   :  { %v691_v58 = vor.u32 %v805_v52, %v690_v51  ;;  %v779_v60 = vld [vmem:[#allocation7 + $0x8] sm:$0xf0]  ;;  %v682_v61 = vld [vmem:[#allocation8] sm:$0xf]  ;;  %v803_v62 = vld [vmem:[#allocation8 + $0x4] sm:$0xf0]  ;;  %v627_v1 = vor.u32 %v787_v56, %v624_v57 }
  0x26   :  { %270 = vmatpush.bf16.msra.mxu0 %v635_v22  ;;  %293 = vmatpush.bf16.msra.mxu2 %v679_v53  ;;  %v816_v63 = vld [vmem:[#allocation8 + $0x74] sm:$0xf]  ;;  %v740_v0 = vld [vmem:[#allocation8 + $0x78] sm:$0xf0]  ;;  %v587_v2 = vor.u32 %v779_v60, %v586_v59  ;;  %v612_v5 = vld [vmem:[#allocation7 + $0x3c] sm:$0xf0]  ;;  %v683_v6 = vor.u32 %v803_v62, %v682_v61 }
  0x27   :  { %405 = vmatpush.bf16.msra.mxu3 %v715_v25  ;;  %v101_v3 = vld [vmem:[#allocation2] sm:$0xff]  ;;  %v1068_v7 = vld [vmem:[#allocation5] sm:$0xff]  ;;  %v743_v8 = vor.u32 %v816_v63, %v740_v0  ;;  %v814_v9 = vld [vmem:[#allocation8 + $0x64] sm:$0xf]  ;;  %s1012_s30 = smov [#allocation11]   ;;  %s572_s11 = sshll.u32 %s1095_s7, 4  ;;  %s573_s11 = int_to_ptr.hbm [resolvable:$true] %s572_s11 }
  0x28   :  { %282 = vmatpush.bf16.msra.mxu1 %v651_v43  ;;  %v784_v4 = vld [vmem:[#allocation7 + $0x34] sm:$0xf]  ;;  %v732_v10 = vld [vmem:[#allocation8 + $0x68] sm:$0xf0]  ;;  %v1070_v11 = vpack.c.bf16 %v101_v3, %v101_v3  ;;  %v104_v13 = vpack.c.bf16 %v1068_v7, %v1068_v7  ;;  %v724_v16 = vld [vmem:[#allocation8 + $0x58] sm:$0xf0] }
  0x29   :  { %v615_v12 = vor.u32 %v784_v4, %v612_v5  ;;  %v735_v14 = vor.u32 %v814_v9, %v732_v10  ;;  %v812_v15 = vld [vmem:[#allocation8 + $0x54] sm:$0xf]  ;;  %v810_v18 = vld [vmem:[#allocation8 + $0x44] sm:$0xf]  ;;  %v716_v19 = vld [vmem:[#allocation8 + $0x48] sm:$0xf0] }
  0x2a   :  { %271 = vmatpush.bf16.msra.mxu0 %v623_v34  ;;  %v727_v17 = vor.u32 %v812_v15, %v724_v16  ;;  %v719_v20 = vor.u32 %v810_v18, %v716_v19  ;;  %v808_v21 = vld [vmem:[#allocation8 + $0x34] sm:$0xf]  ;;  %v708_v22 = vld [vmem:[#allocation8 + $0x38] sm:$0xf0]  ;;  %v806_v24 = vld [vmem:[#allocation8 + $0x24] sm:$0xf] }
  0x2b   :  { %406 = vmatpush.bf16.msra.mxu3 %v707_v37  ;;  %v711_v23 = vor.u32 %v808_v21, %v708_v22  ;;  %v700_v25 = vld [vmem:[#allocation8 + $0x28] sm:$0xf0]  ;;  %v781_v27 = vld [vmem:[#allocation7 + $0x1c] sm:$0xf]  ;;  %v600_v28 = vld [vmem:[#allocation7 + $0x24] sm:$0xf0] }
  0x2c   :  { %283 = vmatpush.bf16.msra.mxu1 %v639_v54  ;;  %v703_v26 = vor.u32 %v806_v24, %v700_v25  ;;  %v804_v29 = vld [vmem:[#allocation8 + $0x14] sm:$0xf]  ;;  %v603_v30 = vor.u32 %v781_v27, %v600_v28  ;;  %v692_v31 = vld [vmem:[#allocation8 + $0x18] sm:$0xf0]  ;;  %v666_v33 = vld [vmem:[#allocation7 + $0x98] sm:$0xf] }
  0x2d   :  { %v695_v32 = vor.u32 %v804_v29, %v692_v31  ;;  %v798_v34 = vld [vmem:[#allocation7 + $0xa0] sm:$0xf0]  ;;  %v588_v37 = vld [vmem:[#allocation7 + $0xc] sm:$0xf0]  ;;  %v684_v39 = vld [vmem:[#allocation8 + $0x8] sm:$0xf0] }
  0x2e   :  { %272 = vmatpush.bf16.msra.mxu0 %v611_v44  ;;  %v778_v35 = vld [vmem:[#allocation7 + $0x4] sm:$0xf]  ;;  %v667_v36 = vor.u32 %v798_v34, %v666_v33  ;;  %v654_v42 = vld [vmem:[#allocation7 + $0x80] sm:$0xf]  ;;  %v795_v43 = vld [vmem:[#allocation7 + $0x88] sm:$0xf0] }
  0x2f   :  { %407 = vmatpush.bf16.msra.mxu3 %v699_v47  ;;  %v802_v38 = vld [vmem:[#allocation8 + $0x4] sm:$0xf]  ;;  %v591_v40 = vor.u32 %v778_v35, %v588_v37  ;;  %v655_v44 = vor.u32 %v795_v43, %v654_v42  ;;  %v642_v45 = vld [vmem:[#allocation7 + $0x68] sm:$0xf]  ;;  %v792_v46 = vld [vmem:[#allocation7 + $0x70] sm:$0xf0] }
  0x30   :  { %284 = vmatpush.bf16.msra.mxu1 %v627_v1  ;;  %v687_v41 = vor.u32 %v802_v38, %v684_v39  ;;  %294 = vmatpush.bf16.msra.mxu2 %v667_v36  ;;  %v643_v47 = vor.u32 %v792_v46, %v642_v45  ;;  %v825_v48 = vld [vmem:[#allocation10 + $0x38] sm:$0xff]  ;;  %v630_v49 = vld [vmem:[#allocation7 + $0x50] sm:$0xf]  ;;  %v786_v54 = vld [vmem:[#allocation7 + $0x40] sm:$0xf0]  ;;  %s570_s8 = sshll.u32 %s1012_s30, 4  ;;  %s571_s8 = int_to_ptr.vmem [resolvable:$true] %s570_s8 }
  0x31   :  { %v789_v50 = vld [vmem:[#allocation7 + $0x58] sm:$0xf0]  ;;  %v824_v52 = vld [vmem:[#allocation10 + $0x30] sm:$0xff]  ;;  %v618_v53 = vld [vmem:[#allocation7 + $0x38] sm:$0xf] }
  0x32   :  { %273 = vmatpush.bf16.msra.mxu0 %v599_v55  ;;  %v631_v51 = vor.u32 %v789_v50, %v630_v49  ;;  %v619_v55 = vor.u32 %v786_v54, %v618_v53  ;;  %v823_v56 = vld [vmem:[#allocation10 + $0x28] sm:$0xff]  ;;  %v606_v57 = vld [vmem:[#allocation7 + $0x20] sm:$0xf]  ;;  %v780_v62 = vld [vmem:[#allocation7 + $0x10] sm:$0xf0] }
  0x33   :  { %408 = vmatpush.bf16.msra.mxu3 %v691_v58  ;;  %v783_v58 = vld [vmem:[#allocation7 + $0x28] sm:$0xf0]  ;;  %v822_v60 = vld [vmem:[#allocation10 + $0x20] sm:$0xff]  ;;  %v594_v61 = vld [vmem:[#allocation7 + $0x8] sm:$0xf] }
  0x34   :  { %285 = vmatpush.bf16.msra.mxu1 %v615_v12  ;;  %295 = vmatpush.bf16.msra.mxu2 %v655_v44  ;;  %v607_v59 = vor.u32 %v783_v58, %v606_v57  ;;  %v595_v63 = vor.u32 %v780_v62, %v594_v61  ;;  %v821_v0 = vld [vmem:[#allocation10 + $0x18] sm:$0xff]  ;;  %v820_v1 = vld [vmem:[#allocation10 + $0x10] sm:$0xff]  ;;  %v819_v3 = vld [vmem:[#allocation10 + $0x8] sm:$0xff] }
  0x35   :  { %v105_v4 = vld [vmem:[%s1093_s5] sm:$0x3]  ;;  %v818_v5 = vld [vmem:[#allocation10] sm:$0xff] }
  0x36   :  { %274 = vmatpush.bf16.msra.mxu0 %v587_v2  ;;  %v432_v33 = vperm.slane %v105_v4, 1 }
  0x37   :  { %409 = vmatpush.bf16.msra.mxu3 %v683_v6  ;;  %v431_v6 = vperm.slane %v105_v4, 0 }
  0x38   :  { %286 = vmatpush.bf16.msra.mxu1 %v603_v30  ;;  %296 = vmatpush.bf16.msra.mxu2 %v643_v47  ;;  %v838_v47 = vld [vmem:[%s1094_s6] ss:$0 sm:$0xff] }
  0x39   :  { %275 = vmatmul.bf16.vlgmr.msra.gmra.mxu0 %v1070_v11 }
  0x3a   :  { %415 = vmatpush.bf16.msrb.mxu0 %v743_v8  ;;  %410 = vmatmul.bf16.vlgmr.msra.gmra.mxu3 %v104_v13 }
  0x3c   :  { %287 = vmatpush.bf16.msra.mxu1 %v591_v40  ;;  %297 = vmatpush.bf16.msra.mxu2 %v631_v51 }
  0x3e   :  { %416 = vmatpush.bf16.msrb.mxu0 %v735_v14 }
  0x3f   :  { %288 = vmatmul.bf16.vlgmr.msra.gmra.mxu1 %v1070_v11 }
  0x40   :  { %541 = vmatpush.bf16.msrb.mxu1 %v825_v48  ;;  %298 = vmatpush.bf16.msra.mxu2 %v619_v55 }
  0x42   :  { %417 = vmatpush.bf16.msrb.mxu0 %v727_v17 }
  0x44   :  { %542 = vmatpush.bf16.msrb.mxu1 %v824_v52  ;;  %299 = vmatpush.bf16.msra.mxu2 %v607_v59 }
  0x46   :  { %418 = vmatpush.bf16.msrb.mxu0 %v719_v20 }
  0x48   :  { %543 = vmatpush.bf16.msrb.mxu1 %v823_v56  ;;  %300 = vmatpush.bf16.msra.mxu2 %v595_v63 }
  0x4a   :  { %419 = vmatpush.bf16.msrb.mxu0 %v711_v23 }
  0x4b   :  { %301 = vmatmul.bf16.vlgmr.msra.gmra.mxu2 %v1070_v11 }
  0x4c   :  { %544 = vmatpush.bf16.msrb.mxu1 %v822_v60 }
  0x4e   :  { %420 = vmatpush.bf16.msrb.mxu0 %v703_v26 }
  0x50   :  { %545 = vmatpush.bf16.msrb.mxu1 %v821_v0 }
  0x52   :  { %421 = vmatpush.bf16.msrb.mxu0 %v695_v32 }
  0x54   :  { %546 = vmatpush.bf16.msrb.mxu1 %v820_v1 }
  0x56   :  { %422 = vmatpush.bf16.msrb.mxu0 %v687_v41 }
  0x58   :  { %547 = vmatpush.bf16.msrb.mxu1 %v819_v3 }
  0x59   :  { %423 = vmatmul.bf16.vlgmr.msrb.gmra.mxu0 %v104_v13 }
  0x5c   :  { %548 = vmatpush.bf16.msrb.mxu1 %v818_v5 }
  0xb6   :  { %v276_v2 = vpop.f32.mrf.mxu0 }
  0xbc   :  { %v289_v28 = vpop.f32.mrf.mxu1 }
  0xbd   :  { %v411_v8 = vpop.f32.mrf.mxu3 }
  0xbe   :  { %v428_v9 = vadd.f32 %v411_v8, %v276_v2  ;;  %v278_v10 = vpop.f32.mrf.mxu0 }
  0xc0   :  { %v435_v12 = vadd.f32 %v431_v6, %v428_v9 }
  0xc2   :  { %v744_v13 = vmul.f32 -1.442695, %v435_v12 }
  0xc4   :  { %839 = vpow2.f32 %v744_v13  ;;  %v291_v30 = vpop.f32.mrf.mxu1 }
  0xc5   :  { %v413_v14 = vpop.f32.mrf.mxu3 }
  0xca   :  { %v840_v15 = vpop.eup %839 }
  0xcb   :  { %v443_v11 = vadd.f32 1.0, %v840_v15 }
  0xcd   :  { %841 = vrcp.f32 %v443_v11  ;;  %v456_v19 = vand.u32 2147483648, %v443_v11  ;;  %v454_v21 = vand.u32 2147483647, %v443_v11  ;;  %vm450_vm1 = vweird.f32 %v443_v11 }
  0xce   :  { %v302_v36 = vpop.f32.mrf.mxu2 }
  0xcf   :  { %v457_v23 = vor.u32 1.1754944e-38, %v456_v19  ;;  %vm455_vm3 = vcmp.eq.f32.partialorder %v454_v21, 8.507059e+37 }
  0xd3   :  { %v842_v16 = vpop.eup %841 }
  0xd4   :  { %v446_v17 = vmul.f32 %v842_v16, %v443_v11  ;;  %vm451_vm0 = vweird.f32 %v842_v16 }
  0xd5   :  { %vm452_vm2 = vmor %vm450_vm1, %vm451_vm0 }
  0xd6   :  { %v447_v18 = vsub.f32 1.0, %v446_v17  ;;  %v424_v29 = vpop.f32.mrf.mxu0  ;;  %v304_v37 = vpop.f32.mrf.mxu2 }
  0xd7   :  { %v429_v32 = vadd.f32 %v424_v29, %v289_v28 }
  0xd8   :  { %v448_v20 = vmul.f32 %v842_v16, %v447_v18 }
  0xd9   :  { %v436_v34 = vadd.f32 %v432_v33, %v429_v32 }
  0xda   :  { %v449_v22 = vadd.f32 %v842_v16, %v448_v20 }
  0xdb   :  { %v745_v35 = vmul.f32 -1.442695, %v436_v34 }
  0xdc   :  { %v453_v24 = vsel %vm452_vm2, %v842_v16, %v449_v22 }
  0xdd   :  { %v458_v25 = vsel %vm455_vm3, %v457_v23, %v453_v24  ;;  %843 = vpow2.f32 %v745_v35 }
  0xde   :  { %v475_v26 = vmul.f32 %v458_v25, %v1068_v7  ;;  %v426_v31 = vpop.f32.mrf.mxu0 }
  0xe0   :  { %v476_v27 = vpack.c.bf16 %v475_v26, %v475_v26 }
  0xe2   :  { %549 = vmatmul.bf16.vlgmr.msrb.gmra.mxu1 %v476_v27 }
  0xe3   :  { %v844_v38 = vpop.eup %843 }
  0xe4   :  { %v444_v39 = vadd.f32 1.0, %v844_v38 }
  0xe6   :  { %845 = vrcp.f32 %v444_v39  ;;  %vm465_vm4 = vweird.f32 %v444_v39  ;;  %v471_v44 = vand.u32 2147483648, %v444_v39  ;;  %v469_v46 = vand.u32 2147483647, %v444_v39 }
  0xe8   :  { %v472_v50 = vor.u32 1.1754944e-38, %v471_v44  ;;  %vm470_vm7 = vcmp.eq.f32.partialorder %v469_v46, 8.507059e+37 }
  0xec   :  { %v846_v40 = vpop.eup %845 }
  0xed   :  { %v461_v41 = vmul.f32 %v846_v40, %v444_v39  ;;  %vm466_vm5 = vweird.f32 %v846_v40 }
  0xee   :  { %vm467_vm6 = vmor %vm465_vm4, %vm466_vm5 }
  0xef   :  { %v462_v42 = vsub.f32 1.0, %v461_v41 }
  0xf1   :  { %v463_v43 = vmul.f32 %v846_v40, %v462_v42 }
  0xf3   :  { %v464_v45 = vadd.f32 %v846_v40, %v463_v43 }
  0xf5   :  { %v468_v51 = vsel %vm467_vm6, %v846_v40, %v464_v45 }
  0xf6   :  { %v473_v53 = vsel %vm470_vm7, %v472_v50, %v468_v51 }
  0xf7   :  { %v560_v55 = vsub.f32 1.0, %v473_v53 }
  0xf9   :  { %v561_v57 = vmul.f32 %v560_v55, %v1068_v7 }
 0x15f   :  { %v550_v48 = vpop.f32.mrf.mxu1 }
 0x160   :  { %v554_v49 = vadd.f32 %v550_v48, %v302_v36 }
 0x162   :  { %v558_v52 = vadd.f32 %v838_v47, %v554_v49 }
 0x164   :  { %847 = vtanh.f32 %v558_v52 }
 0x167   :  { %v552_v54 = vpop.f32.mrf.mxu1 }
 0x16a   :  { %v848_v56 = vpop.eup %847 }
 0x16b   :  { %v562_v58 = vmul.f32 %v848_v56, %v473_v53 }
 0x16d   :  { %v563_v59 = vadd.f32 %v562_v58, %v561_v57 }
 0x16f   :  { %564 = vst [vmem:[#allocation11] sm:$0xff] %v563_v59 }
 0x170   :  { %575 = dma.vmem_to_hbm [thread:$0]  %s571_s8, 128, %s573_s11, [#allocation4]  }
 0x171   :  { %999 = dma.done.wait [#allocation4], 128  }
 0x172   :  { %1000 = vsyncadd [#allocation4], 4294967168 }
 0x173   :  { %580 = vsyncpa [#allocation3], 1 }
 0x174   :  { %581 = vsyncpa [#allocation6], 1 }
 0x175   :  { %582 = vsyncpa [#allocation9], 1 }
 0x176   :  { %583 = vsyncpa [#allocation4], 1 }

// kernel: tpu_custom_call.1
= control target key start
LH: loop header
LB: loop body
LE: loop exit
PB: predicated region body
PF: predicated region fallthrough
CT: control target
= control target key end

     0   :  { %12 = vsyncpa [#allocation3], 0  ;;  %s1088_s0 = inlined_call_operand.hbm [shape: f32[8,128], index: 0, kind: input, shape index: {}]   ;;  %s1089_s1 = inlined_call_operand.hbm [shape: f32[8,128], index: 1, kind: input, shape index: {}]   ;;  %s1090_s2 = inlined_call_operand.hbm [shape: bf16[128,384], index: 2, kind: input, shape index: {}]   ;;  %s1091_s3 = inlined_call_operand.hbm [shape: bf16[128,256], index: 3, kind: input, shape index: {}]   ;;  %s1092_s4 = inlined_call_operand.hbm [shape: bf16[128,128], index: 4, kind: input, shape index: {}]   ;;  %s1093_s5 = inlined_call_operand.vmem [shape: f32[1,256], index: 5, kind: input, shape index: {}]   ;;  %s1094_s6 = inlined_call_operand.vmem [shape: f32[1,128], index: 6, kind: input, shape index: {}]   ;;  %s1095_s7 = inlined_call_operand.hbm [shape: f32[8,128], index: 7, kind: output, shape index: {}]  }
   0x1   :  { %13 = vsyncpa [#allocation6], 0 }
   0x2   :  { %14 = vsyncpa [#allocation9], 0  ;;  %s32_s26 = sshll.u32 %s1089_s1, 4  ;;  %s33_s26 = int_to_ptr.hbm [resolvable:$true] %s32_s26 }
   0x3   :  { %15 = vsyncpa [#allocation4], 0  ;;  %s1001_s27 = smov [#allocation5]   ;;  %s55_s8 = sshll.u32 %s1091_s3, 4  ;;  %s56_s8 = int_to_ptr.hbm [resolvable:$true] %s55_s8 }
   0x4   :  { %s34_s28 = sshll.u32 %s1001_s27, 4  ;;  %s1002_s9 = smov [#allocation8]   ;;  %s35_s28 = int_to_ptr.vmem [resolvable:$true] %s34_s28 }
   0x5   :  { %37 = dma.hbm_to_vmem [thread:$0]  %s33_s26, 128, %s35_s28, [#allocation6]  }
   0x6   :  { %s57_s10 = sshll.u32 %s1002_s9, 4  ;;  %s1003_s11 = smov 128   ;;  %s58_s10 = int_to_ptr.vmem [resolvable:$true] %s57_s10 }
   0x7   :  { %s1004_s12 = smov 8   ;;  %s21_s1 = sshll.u32 %s1088_s0, 4  ;;  %s22_s1 = int_to_ptr.hbm [resolvable:$true] %s21_s1 }
   0x8   :  { %63 = dma.hbm_to_vmem [thread:$0]  %s56_s8, 2048, %s58_s10, [#allocation9], %s1003_s11, %s1003_s11, %s1004_s12  }
   0x9   :  { %s1005_s15 = smov [#allocation2]   ;;  %s42_s3 = sshll.u32 %s1090_s2, 4  ;;  %s43_s3 = int_to_ptr.hbm [resolvable:$true] %s42_s3 }
   0xa   :  { %s23_s16 = sshll.u32 %s1005_s15, 4  ;;  %s1006_s19 = smov [#allocation7]   ;;  %s24_s16 = int_to_ptr.vmem [resolvable:$true] %s23_s16 }
   0xb   :  { %26 = dma.hbm_to_vmem [thread:$0]  %s22_s1, 128, %s24_s16, [#allocation3]  }
   0xc   :  { %s44_s20 = sshll.u32 %s1006_s19, 4  ;;  %s1007_s21 = smov 192   ;;  %s45_s20 = int_to_ptr.vmem [resolvable:$true] %s44_s20 }
   0xd   :  { %s1008_s22 = smov 12   ;;  %s68_s0 = sshll.u32 %s1092_s4, 4  ;;  %s69_s0 = int_to_ptr.hbm [resolvable:$true] %s68_s0 }
   0xe   :  { %50 = dma.hbm_to_vmem [thread:$0]  %s43_s3, 3072, %s45_s20, [#allocation6], %s1007_s21, %s1007_s21, %s1008_s22  }
   0xf   :  { %s1009_s25 = smov [#allocation10]   ;;  %s1010_s27 = smov 64  }
  0x10   :  { %s70_s26 = sshll.u32 %s1009_s25, 4  ;;  %s1011_s28 = smov 4   ;;  %s71_s26 = int_to_ptr.vmem [resolvable:$true] %s70_s26 }
  0x11   :  { %76 = dma.hbm_to_vmem [thread:$0]  %s69_s0, 1024, %s71_s26, [#allocation9], %s1010_s27, %s1010_s27, %s1011_s28  }
  0x12   :  { %993 = dma.done.wait [#allocation3], 128  }
  0x13   :  { %994 = vsyncadd [#allocation3], 4294967168 }
  0x14   :  { %995 = dma.done.wait [#allocation6], 3200  }
  0x15   :  { %996 = vsyncadd [#allocation6], 4294964096 }
  0x16   :  { %997 = dma.done.wait [#allocation9], 3072  }
  0x17   :  { %998 = vsyncadd [#allocation9], 4294964224  ;;  %v670_v0 = vld [vmem:[#allocation7 + $0xa8] sm:$0xf]  ;;  %v800_v1 = vld [vmem:[#allocation7 + $0xb0] sm:$0xf0] }
  0x18   :  { %v738_v2 = vld [vmem:[#allocation8 + $0x70] sm:$0xf]  ;;  %v671_v3 = vor.u32 %v800_v1, %v670_v0  ;;  %v817_v4 = vld [vmem:[#allocation8 + $0x74] sm:$0xf0]  ;;  %v797_v6 = vld [vmem:[#allocation7 + $0x98] sm:$0xf0] }
  0x19   :  { %v658_v5 = vld [vmem:[#allocation7 + $0x90] sm:$0xf]  ;;  %v739_v7 = vor.u32 %v817_v4, %v738_v2  ;;  %v730_v8 = vld [vmem:[#allocation8 + $0x60] sm:$0xf]  ;;  %v815_v9 = vld [vmem:[#allocation8 + $0x64] sm:$0xf0] }
  0x1a   :  { %267 = vmatpush.bf16.msra.mxu0 %v671_v3  ;;  %v659_v10 = vor.u32 %v797_v6, %v658_v5  ;;  %v731_v11 = vor.u32 %v815_v9, %v730_v8  ;;  %v646_v12 = vld [vmem:[#allocation7 + $0x78] sm:$0xf]  ;;  %v794_v13 = vld [vmem:[#allocation7 + $0x80] sm:$0xf0]  ;;  %v722_v14 = vld [vmem:[#allocation8 + $0x50] sm:$0xf] }
  0x1b   :  { %402 = vmatpush.bf16.msra.mxu3 %v739_v7  ;;  %v813_v15 = vld [vmem:[#allocation8 + $0x54] sm:$0xf0]  ;;  %v647_v16 = vor.u32 %v794_v13, %v646_v12  ;;  %v634_v18 = vld [vmem:[#allocation7 + $0x60] sm:$0xf]  ;;  %v791_v19 = vld [vmem:[#allocation7 + $0x68] sm:$0xf0] }
  0x1c   :  { %v723_v17 = vor.u32 %v813_v15, %v722_v14  ;;  %v714_v20 = vld [vmem:[#allocation8 + $0x40] sm:$0xf]  ;;  %v811_v21 = vld [vmem:[#allocation8 + $0x44] sm:$0xf0]  ;;  %v635_v22 = vor.u32 %v791_v19, %v634_v18  ;;  %v799_v23 = vld [vmem:[#allocation7 + $0xac] sm:$0xf] }
  0x1d   :  { %v672_v24 = vld [vmem:[#allocation7 + $0xb4] sm:$0xf0]  ;;  %v715_v25 = vor.u32 %v811_v21, %v714_v20  ;;  %v622_v26 = vld [vmem:[#allocation7 + $0x48] sm:$0xf]  ;;  %v788_v27 = vld [vmem:[#allocation7 + $0x50] sm:$0xf0] }
  0x1e   :  { %268 = vmatpush.bf16.msra.mxu0 %v659_v10  ;;  %v675_v28 = vor.u32 %v799_v23, %v672_v24  ;;  %v796_v29 = vld [vmem:[#allocation7 + $0x94] sm:$0xf]  ;;  %v706_v30 = vld [vmem:[#allocation8 + $0x30] sm:$0xf]  ;;  %v809_v31 = vld [vmem:[#allocation8 + $0x34] sm:$0xf0]  ;;  %v623_v34 = vor.u32 %v788_v27, %v622_v26 }
  0x1f   :  { %403 = vmatpush.bf16.msra.mxu3 %v731_v11  ;;  %v660_v32 = vld [vmem:[#allocation7 + $0x9c] sm:$0xf0]  ;;  %v793_v35 = vld [vmem:[#allocation7 + $0x7c] sm:$0xf]  ;;  %v648_v36 = vld [vmem:[#allocation7 + $0x84] sm:$0xf0]  ;;  %v707_v37 = vor.u32 %v809_v31, %v706_v30 }
  0x20   :  { %280 = vmatpush.bf16.msra.mxu1 %v675_v28  ;;  %v663_v33 = vor.u32 %v796_v29, %v660_v32  ;;  %v610_v38 = vld [vmem:[#allocation7 + $0x30] sm:$0xf]  ;;  %v785_v39 = vld [vmem:[#allocation7 + $0x38] sm:$0xf0]  ;;  %v698_v40 = vld [vmem:[#allocation8 + $0x20] sm:$0xf]  ;;  %v651_v43 = vor.u32 %v793_v35, %v648_v36 }
  0x21   :  { %v807_v41 = vld [vmem:[#allocation8 + $0x24] sm:$0xf0]  ;;  %v598_v42 = vld [vmem:[#allocation7 + $0x18] sm:$0xf]  ;;  %v611_v44 = vor.u32 %v785_v39, %v610_v38  ;;  %v790_v45 = vld [vmem:[#allocation7 + $0x64] sm:$0xf] }
  0x22   :  { %269 = vmatpush.bf16.msra.mxu0 %v647_v16  ;;  %v636_v46 = vld [vmem:[#allocation7 + $0x6c] sm:$0xf0]  ;;  %v699_v47 = vor.u32 %v807_v41, %v698_v40  ;;  %v782_v48 = vld [vmem:[#allocation7 + $0x20] sm:$0xf0]  ;;  %v801_v50 = vld [vmem:[#allocation7 + $0xb8] sm:$0xf0] }
  0x23   :  { %404 = vmatpush.bf16.msra.mxu3 %v723_v17  ;;  %v678_v49 = vld [vmem:[#allocation7 + $0xb0] sm:$0xf]  ;;  %v805_v52 = vld [vmem:[#allocation8 + $0x14] sm:$0xf0]  ;;  %v639_v54 = vor.u32 %v790_v45, %v636_v46  ;;  %v599_v55 = vor.u32 %v782_v48, %v598_v42  ;;  %v787_v56 = vld [vmem:[#allocation7 + $0x4c] sm:$0xf] }
  0x24   :  { %281 = vmatpush.bf16.msra.mxu1 %v663_v33  ;;  %v690_v51 = vld [vmem:[#allocation8 + $0x10] sm:$0xf]  ;;  %v679_v53 = vor.u32 %v801_v50, %v678_v49  ;;  %v624_v57 = vld [vmem:[#allocation7 + $0x54] sm:$0xf0]  ;;  %v586_v59 = vld [vmem:[#allocation7] sm:$0xf] }
  0x25   :  { %v691_v58 = vor.u32 %v805_v52, %v690_v51  ;;  %v779_v60 = vld [vmem:[#allocation7 + $0x8] sm:$0xf0]  ;;  %v682_v61 = vld [vmem:[#allocation8] sm:$0xf]  ;;  %v803_v62 = vld [vmem:[#allocation8 + $0x4] sm:$0xf0]  ;;  %v627_v1 = vor.u32 %v787_v56, %v624_v57 }
  0x26   :  { %270 = vmatpush.bf16.msra.mxu0 %v635_v22  ;;  %293 = vmatpush.bf16.msra.mxu2 %v679_v53  ;;  %v816_v63 = vld [vmem:[#allocation8 + $0x74] sm:$0xf]  ;;  %v740_v0 = vld [vmem:[#allocation8 + $0x78] sm:$0xf0]  ;;  %v587_v2 = vor.u32 %v779_v60, %v586_v59  ;;  %v612_v5 = vld [vmem:[#allocation7 + $0x3c] sm:$0xf0]  ;;  %v683_v6 = vor.u32 %v803_v62, %v682_v61 }
  0x27   :  { %405 = vmatpush.bf16.msra.mxu3 %v715_v25  ;;  %v101_v3 = vld [vmem:[#allocation2] sm:$0xff]  ;;  %v1068_v7 = vld [vmem:[#allocation5] sm:$0xff]  ;;  %v743_v8 = vor.u32 %v816_v63, %v740_v0  ;;  %v814_v9 = vld [vmem:[#allocation8 + $0x64] sm:$0xf]  ;;  %s1012_s30 = smov [#allocation11]   ;;  %s572_s11 = sshll.u32 %s1095_s7, 4  ;;  %s573_s11 = int_to_ptr.hbm [resolvable:$true] %s572_s11 }
  0x28   :  { %282 = vmatpush.bf16.msra.mxu1 %v651_v43  ;;  %v784_v4 = vld [vmem:[#allocation7 + $0x34] sm:$0xf]  ;;  %v732_v10 = vld [vmem:[#allocation8 + $0x68] sm:$0xf0]  ;;  %v1070_v11 = vpack.c.bf16 %v101_v3, %v101_v3  ;;  %v104_v13 = vpack.c.bf16 %v1068_v7, %v1068_v7  ;;  %v724_v16 = vld [vmem:[#allocation8 + $0x58] sm:$0xf0] }
  0x29   :  { %v615_v12 = vor.u32 %v784_v4, %v612_v5  ;;  %v735_v14 = vor.u32 %v814_v9, %v732_v10  ;;  %v812_v15 = vld [vmem:[#allocation8 + $0x54] sm:$0xf]  ;;  %v810_v18 = vld [vmem:[#allocation8 + $0x44] sm:$0xf]  ;;  %v716_v19 = vld [vmem:[#allocation8 + $0x48] sm:$0xf0] }
  0x2a   :  { %271 = vmatpush.bf16.msra.mxu0 %v623_v34  ;;  %v727_v17 = vor.u32 %v812_v15, %v724_v16  ;;  %v719_v20 = vor.u32 %v810_v18, %v716_v19  ;;  %v808_v21 = vld [vmem:[#allocation8 + $0x34] sm:$0xf]  ;;  %v708_v22 = vld [vmem:[#allocation8 + $0x38] sm:$0xf0]  ;;  %v806_v24 = vld [vmem:[#allocation8 + $0x24] sm:$0xf] }
  0x2b   :  { %406 = vmatpush.bf16.msra.mxu3 %v707_v37  ;;  %v711_v23 = vor.u32 %v808_v21, %v708_v22  ;;  %v700_v25 = vld [vmem:[#allocation8 + $0x28] sm:$0xf0]  ;;  %v781_v27 = vld [vmem:[#allocation7 + $0x1c] sm:$0xf]  ;;  %v600_v28 = vld [vmem:[#allocation7 + $0x24] sm:$0xf0] }
  0x2c   :  { %283 = vmatpush.bf16.msra.mxu1 %v639_v54  ;;  %v703_v26 = vor.u32 %v806_v24, %v700_v25  ;;  %v804_v29 = vld [vmem:[#allocation8 + $0x14] sm:$0xf]  ;;  %v603_v30 = vor.u32 %v781_v27, %v600_v28  ;;  %v692_v31 = vld [vmem:[#allocation8 + $0x18] sm:$0xf0]  ;;  %v666_v33 = vld [vmem:[#allocation7 + $0x98] sm:$0xf] }
  0x2d   :  { %v695_v32 = vor.u32 %v804_v29, %v692_v31  ;;  %v798_v34 = vld [vmem:[#allocation7 + $0xa0] sm:$0xf0]  ;;  %v588_v37 = vld [vmem:[#allocation7 + $0xc] sm:$0xf0]  ;;  %v684_v39 = vld [vmem:[#allocation8 + $0x8] sm:$0xf0] }
  0x2e   :  { %272 = vmatpush.bf16.msra.mxu0 %v611_v44  ;;  %v778_v35 = vld [vmem:[#allocation7 + $0x4] sm:$0xf]  ;;  %v667_v36 = vor.u32 %v798_v34, %v666_v33  ;;  %v654_v42 = vld [vmem:[#allocation7 + $0x80] sm:$0xf]  ;;  %v795_v43 = vld [vmem:[#allocation7 + $0x88] sm:$0xf0] }
  0x2f   :  { %407 = vmatpush.bf16.msra.mxu3 %v699_v47  ;;  %v802_v38 = vld [vmem:[#allocation8 + $0x4] sm:$0xf]  ;;  %v591_v40 = vor.u32 %v778_v35, %v588_v37  ;;  %v655_v44 = vor.u32 %v795_v43, %v654_v42  ;;  %v642_v45 = vld [vmem:[#allocation7 + $0x68] sm:$0xf]  ;;  %v792_v46 = vld [vmem:[#allocation7 + $0x70] sm:$0xf0] }
  0x30   :  { %284 = vmatpush.bf16.msra.mxu1 %v627_v1  ;;  %v687_v41 = vor.u32 %v802_v38, %v684_v39  ;;  %294 = vmatpush.bf16.msra.mxu2 %v667_v36  ;;  %v643_v47 = vor.u32 %v792_v46, %v642_v45  ;;  %v825_v48 = vld [vmem:[#allocation10 + $0x38] sm:$0xff]  ;;  %v630_v49 = vld [vmem:[#allocation7 + $0x50] sm:$0xf]  ;;  %v786_v54 = vld [vmem:[#allocation7 + $0x40] sm:$0xf0]  ;;  %s570_s8 = sshll.u32 %s1012_s30, 4  ;;  %s571_s8 = int_to_ptr.vmem [resolvable:$true] %s570_s8 }
  0x31   :  { %v789_v50 = vld [vmem:[#allocation7 + $0x58] sm:$0xf0]  ;;  %v824_v52 = vld [vmem:[#allocation10 + $0x30] sm:$0xff]  ;;  %v618_v53 = vld [vmem:[#allocation7 + $0x38] sm:$0xf] }
  0x32   :  { %273 = vmatpush.bf16.msra.mxu0 %v599_v55  ;;  %v631_v51 = vor.u32 %v789_v50, %v630_v49  ;;  %v619_v55 = vor.u32 %v786_v54, %v618_v53  ;;  %v823_v56 = vld [vmem:[#allocation10 + $0x28] sm:$0xff]  ;;  %v606_v57 = vld [vmem:[#allocation7 + $0x20] sm:$0xf]  ;;  %v780_v62 = vld [vmem:[#allocation7 + $0x10] sm:$0xf0] }
  0x33   :  { %408 = vmatpush.bf16.msra.mxu3 %v691_v58  ;;  %v783_v58 = vld [vmem:[#allocation7 + $0x28] sm:$0xf0]  ;;  %v822_v60 = vld [vmem:[#allocation10 + $0x20] sm:$0xff]  ;;  %v594_v61 = vld [vmem:[#allocation7 + $0x8] sm:$0xf] }
  0x34   :  { %285 = vmatpush.bf16.msra.mxu1 %v615_v12  ;;  %295 = vmatpush.bf16.msra.mxu2 %v655_v44  ;;  %v607_v59 = vor.u32 %v783_v58, %v606_v57  ;;  %v595_v63 = vor.u32 %v780_v62, %v594_v61  ;;  %v821_v0 = vld [vmem:[#allocation10 + $0x18] sm:$0xff]  ;;  %v820_v1 = vld [vmem:[#allocation10 + $0x10] sm:$0xff]  ;;  %v819_v3 = vld [vmem:[#allocation10 + $0x8] sm:$0xff] }
  0x35   :  { %v105_v4 = vld [vmem:[%s1093_s5] sm:$0x3]  ;;  %v818_v5 = vld [vmem:[#allocation10] sm:$0xff] }
  0x36   :  { %274 = vmatpush.bf16.msra.mxu0 %v587_v2  ;;  %v432_v33 = vperm.slane %v105_v4, 1 }
  0x37   :  { %409 = vmatpush.bf16.msra.mxu3 %v683_v6  ;;  %v431_v6 = vperm.slane %v105_v4, 0 }
  0x38   :  { %286 = vmatpush.bf16.msra.mxu1 %v603_v30  ;;  %296 = vmatpush.bf16.msra.mxu2 %v643_v47  ;;  %v838_v47 = vld [vmem:[%s1094_s6] ss:$0 sm:$0xff] }
  0x39   :  { %275 = vmatmul.bf16.vlgmr.msra.gmra.mxu0 %v1070_v11 }
  0x3a   :  { %415 = vmatpush.bf16.msrb.mxu0 %v743_v8  ;;  %410 = vmatmul.bf16.vlgmr.msra.gmra.mxu3 %v104_v13 }
  0x3c   :  { %287 = vmatpush.bf16.msra.mxu1 %v591_v40  ;;  %297 = vmatpush.bf16.msra.mxu2 %v631_v51 }
  0x3e   :  { %416 = vmatpush.bf16.msrb.mxu0 %v735_v14 }
  0x3f   :  { %288 = vmatmul.bf16.vlgmr.msra.gmra.mxu1 %v1070_v11 }
  0x40   :  { %541 = vmatpush.bf16.msrb.mxu1 %v825_v48  ;;  %298 = vmatpush.bf16.msra.mxu2 %v619_v55 }
  0x42   :  { %417 = vmatpush.bf16.msrb.mxu0 %v727_v17 }
  0x44   :  { %542 = vmatpush.bf16.msrb.mxu1 %v824_v52  ;;  %299 = vmatpush.bf16.msra.mxu2 %v607_v59 }
  0x46   :  { %418 = vmatpush.bf16.msrb.mxu0 %v719_v20 }
  0x48   :  { %543 = vmatpush.bf16.msrb.mxu1 %v823_v56  ;;  %300 = vmatpush.bf16.msra.mxu2 %v595_v63 }
  0x4a   :  { %419 = vmatpush.bf16.msrb.mxu0 %v711_v23 }
  0x4b   :  { %301 = vmatmul.bf16.vlgmr.msra.gmra.mxu2 %v1070_v11 }
  0x4c   :  { %544 = vmatpush.bf16.msrb.mxu1 %v822_v60 }
  0x4e   :  { %420 = vmatpush.bf16.msrb.mxu0 %v703_v26 }
  0x50   :  { %545 = vmatpush.bf16.msrb.mxu1 %v821_v0 }
  0x52   :  { %421 = vmatpush.bf16.msrb.mxu0 %v695_v32 }
  0x54   :  { %546 = vmatpush.bf16.msrb.mxu1 %v820_v1 }
  0x56   :  { %422 = vmatpush.bf16.msrb.mxu0 %v687_v41 }
  0x58   :  { %547 = vmatpush.bf16.msrb.mxu1 %v819_v3 }
  0x59   :  { %423 = vmatmul.bf16.vlgmr.msrb.gmra.mxu0 %v104_v13 }
  0x5c   :  { %548 = vmatpush.bf16.msrb.mxu1 %v818_v5 }
  0xb6   :  { %v276_v2 = vpop.f32.mrf.mxu0 }
  0xbc   :  { %v289_v28 = vpop.f32.mrf.mxu1 }
  0xbd   :  { %v411_v8 = vpop.f32.mrf.mxu3 }
  0xbe   :  { %v428_v9 = vadd.f32 %v411_v8, %v276_v2  ;;  %v278_v10 = vpop.f32.mrf.mxu0 }
  0xc0   :  { %v435_v12 = vadd.f32 %v431_v6, %v428_v9 }
  0xc2   :  { %v744_v13 = vmul.f32 -1.442695, %v435_v12 }
  0xc4   :  { %839 = vpow2.f32 %v744_v13  ;;  %v291_v30 = vpop.f32.mrf.mxu1 }
  0xc5   :  { %v413_v14 = vpop.f32.mrf.mxu3 }
  0xca   :  { %v840_v15 = vpop.eup %839 }
  0xcb   :  { %v443_v11 = vadd.f32 1.0, %v840_v15 }
  0xcd   :  { %841 = vrcp.f32 %v443_v11  ;;  %v456_v19 = vand.u32 2147483648, %v443_v11  ;;  %v454_v21 = vand.u32 2147483647, %v443_v11  ;;  %vm450_vm1 = vweird.f32 %v443_v11 }
  0xce   :  { %v302_v36 = vpop.f32.mrf.mxu2 }
  0xcf   :  { %v457_v23 = vor.u32 1.1754944e-38, %v456_v19  ;;  %vm455_vm3 = vcmp.eq.f32.partialorder %v454_v21, 8.507059e+37 }
  0xd3   :  { %v842_v16 = vpop.eup %841 }
  0xd4   :  { %v446_v17 = vmul.f32 %v842_v16, %v443_v11  ;;  %vm451_vm0 = vweird.f32 %v842_v16 }
  0xd5   :  { %vm452_vm2 = vmor %vm450_vm1, %vm451_vm0 }
  0xd6   :  { %v447_v18 = vsub.f32 1.0, %v446_v17  ;;  %v424_v29 = vpop.f32.mrf.mxu0  ;;  %v304_v37 = vpop.f32.mrf.mxu2 }
  0xd7   :  { %v429_v32 = vadd.f32 %v424_v29, %v289_v28 }
  0xd8   :  { %v448_v20 = vmul.f32 %v842_v16, %v447_v18 }
  0xd9   :  { %v436_v34 = vadd.f32 %v432_v33, %v429_v32 }
  0xda   :  { %v449_v22 = vadd.f32 %v842_v16, %v448_v20 }
  0xdb   :  { %v745_v35 = vmul.f32 -1.442695, %v436_v34 }
  0xdc   :  { %v453_v24 = vsel %vm452_vm2, %v842_v16, %v449_v22 }
  0xdd   :  { %v458_v25 = vsel %vm455_vm3, %v457_v23, %v453_v24  ;;  %843 = vpow2.f32 %v745_v35 }
  0xde   :  { %v475_v26 = vmul.f32 %v458_v25, %v1068_v7  ;;  %v426_v31 = vpop.f32.mrf.mxu0 }
  0xe0   :  { %v476_v27 = vpack.c.bf16 %v475_v26, %v475_v26 }
  0xe2   :  { %549 = vmatmul.bf16.vlgmr.msrb.gmra.mxu1 %v476_v27 }
  0xe3   :  { %v844_v38 = vpop.eup %843 }
  0xe4   :  { %v444_v39 = vadd.f32 1.0, %v844_v38 }
  0xe6   :  { %845 = vrcp.f32 %v444_v39  ;;  %vm465_vm4 = vweird.f32 %v444_v39  ;;  %v471_v44 = vand.u32 2147483648, %v444_v39  ;;  %v469_v46 = vand.u32 2147483647, %v444_v39 }
  0xe8   :  { %v472_v50 = vor.u32 1.1754944e-38, %v471_v44  ;;  %vm470_vm7 = vcmp.eq.f32.partialorder %v469_v46, 8.507059e+37 }
  0xec   :  { %v846_v40 = vpop.eup %845 }
  0xed   :  { %v461_v41 = vmul.f32 %v846_v40, %v444_v39  ;;  %vm466_vm5 = vweird.f32 %v846_v40 }
  0xee   :  { %vm467_vm6 = vmor %vm465_vm4, %vm466_vm5 }
  0xef   :  { %v462_v42 = vsub.f32 1.0, %v461_v41 }
  0xf1   :  { %v463_v43 = vmul.f32 %v846_v40, %v462_v42 }
  0xf3   :  { %v464_v45 = vadd.f32 %v846_v40, %v463_v43 }
  0xf5   :  { %v468_v51 = vsel %vm467_vm6, %v846_v40, %v464_v45 }
  0xf6   :  { %v473_v53 = vsel %vm470_vm7, %v472_v50, %v468_v51 }
  0xf7   :  { %v560_v55 = vsub.f32 1.0, %v473_v53 }
  0xf9   :  { %v561_v57 = vmul.f32 %v560_v55, %v1068_v7 }
 0x15f   :  { %v550_v48 = vpop.f32.mrf.mxu1 }
 0x160   :  { %v554_v49 = vadd.f32 %v550_v48, %v302_v36 }
 0x162   :  { %v558_v52 = vadd.f32 %v838_v47, %v554_v49 }
 0x164   :  { %847 = vtanh.f32 %v558_v52 }
 0x167   :  { %v552_v54 = vpop.f32.mrf.mxu1 }
 0x16a   :  { %v848_v56 = vpop.eup %847 }
 0x16b   :  { %v562_v58 = vmul.f32 %v848_v56, %v473_v53 }
 0x16d   :  { %v563_v59 = vadd.f32 %v562_v58, %v561_v57 }
 0x16f   :  { %564 = vst [vmem:[#allocation11] sm:$0xff] %v563_v59 }
 0x170   :  { %575 = dma.vmem_to_hbm [thread:$0]  %s571_s8, 128, %s573_s11, [#allocation4]  }
 0x171   :  { %999 = dma.done.wait [#allocation4], 128  }
 0x172   :  { %1000 = vsyncadd [#allocation4], 4294967168 }
 0x173   :  { %580 = vsyncpa [#allocation3], 1 }
 0x174   :  { %581 = vsyncpa [#allocation6], 1 }
 0x175   :  { %582 = vsyncpa [#allocation9], 1 }
 0x176   :  { %583 = vsyncpa [#allocation4], 1 }

</bundles_post_ra>
